<compile_context>
chip_gen: v6e
topology: v6e:2x2x1
jax: 0.10.0
libtpu: 0.0.40
codegen_flags: <defaults>
</compile_context>

<pallas_src>
import jax
import jax.numpy as jnp
from jax.experimental import pallas as pl
from jax.experimental.pallas import tpu as pltpu


def _round_up(x: int, m: int) -> int:
    return (x + m - 1) // m * m


def puremf_score_kernel(u_ref, i_ref, o_ref):
    """sigmoid(sum(u * i, axis=-1)) on a (TB, D) tile.

    Batch rows sit on sublanes, the latent dim on lanes: the up-cast and
    multiply are VPU work, the reduction is a lane (XLU) reduce, the sigmoid
    is EUP work -- all in VLIW slots that idle while the input DMA streams.
    """
    u = u_ref[...].astype(jnp.float32)               # in-kernel up-cast (VPU)
    it = i_ref[...].astype(jnp.float32)
    s = jnp.sum(u * it, axis=-1, keepdims=True)      # (TB, 1) lane reduce (XLU)
    o_ref[...] = jax.nn.sigmoid(s)                   # EUP exp + reciprocal


def _choose_tile_and_vmem(B: int, D: int, itemsize: int, max_tile_b=None):
    """Pick the batch tile TB and an explicit VMEM limit per TPU generation."""
    # v5e/v6e have 128 MiB physical VMEM, v7x only 64 MiB.
    try:
        cap = pltpu.get_tpu_info().vmem_capacity_bytes
    except Exception:  # conservative fallback: assume v7x-sized VMEM
        cap = 64 * 1024 * 1024
    vmem_limit = min(cap // 2, 48 * 1024 * 1024)     # v5e/v6e: 48 MiB, v7x: 32 MiB

    # Bytes one (TB, D) row occupies in VMEM (lane dim laid out in 128s).
    row_bytes = _round_up(max(D, 1), 128) * itemsize
    # 2 inputs x 2 pipeline buffers must fit in ~3/4 of the limit.
    per_block_budget = (vmem_limit * 3) // 4 // 4
    tb = max(8, per_block_budget // row_bytes)
    tb = min(tb, 16384)                              # diminishing returns past ~4-8 MiB/step
    if max_tile_b is not None:
        tb = min(tb, max_tile_b)
    # Keep >= ~4 grid steps for large batches so both v7x TensorCores get
    # work under dimension_semantics=("parallel",).
    if B >= 4 * 512:
        tb = min(tb, _round_up(pl.cdiv(B, 4), 512))
    tb = max(8, (tb // 8) * 8)                       # sublane-aligned tile
    if tb >= B:
        tb = B                                       # single full block, grid=(1,)
    return tb, vmem_limit


def puremf_forward(user_table, item_table, users, items, *, max_tile_b=None):
    """PureMF.forward: users/items are integer index vectors of shape (B,)."""
    users = users.astype(jnp.int32)
    items = items.astype(jnp.int32)
    B = int(users.shape[0])
    D = int(user_table.shape[1])

    # Gather in the tables' native dtype, natural (B, D) row-major layout.
    # No transpose, no padding copy.
    users_emb = jnp.take(user_table, users, axis=0)   # (B, D)
    items_emb = jnp.take(item_table, items, axis=0)   # (B, D)

    itemsize = jnp.dtype(user_table.dtype).itemsize
    tb, vmem_limit = _choose_tile_and_vmem(B, D, itemsize, max_tile_b)

    out = pl.pallas_call(
        puremf_score_kernel,
        out_shape=jax.ShapeDtypeStruct((B, 1), jnp.float32),
        grid=(pl.cdiv(B, tb),),
        in_specs=[
            pl.BlockSpec((tb, D), lambda b: (b, 0)),
            pl.BlockSpec((tb, D), lambda b: (b, 0)),
        ],
        out_specs=pl.BlockSpec((tb, 1), lambda b: (b, 0)),
        compiler_params=pltpu.CompilerParams(
            dimension_semantics=("parallel",),
            vmem_limit_bytes=vmem_limit,
        ),
    )(users_emb, items_emb)
    return out[:, 0]                                   # (B,)


if __name__ == "__main__":
    # Small, deterministic config consistent with PureMF.__init__:
    # (num_users x latent_dim) and (num_items x latent_dim) tables, N(0,1) init.
    num_users, num_items, latent_dim = 32, 48, 32
    batch = 8

    key = jax.random.PRNGKey(0)
    k_u, k_i, k_uid, k_iid = jax.random.split(key, 4)
    user_table = jax.random.normal(k_u, (num_users, latent_dim), jnp.float32)
    item_table = jax.random.normal(k_i, (num_items, latent_dim), jnp.float32)
    users = jax.random.randint(k_uid, (batch,), 0, num_users, jnp.int32)
    items = jax.random.randint(k_iid, (batch,), 0, num_items, jnp.int32)

    scores = puremf_forward(user_table, item_table, users, items)
    jax.block_until_ready(scores)

    ref = jax.nn.sigmoid(jnp.sum(user_table[users] * item_table[items], axis=1))
    assert scores.shape == (batch,)
    assert jnp.allclose(scores, ref, atol=1e-5, rtol=1e-5)

    # Second small check exercising the tiled path with a partial trailing
    # block (cdiv grid, no batch padding): B=300, TB=128 -> grid of 3.
    b2, d2 = 300, 64
    k_u2, k_i2, k_uid2, k_iid2 = jax.random.split(jax.random.PRNGKey(1), 4)
    ut2 = jax.random.normal(k_u2, (64, d2), jnp.float32)
    it2 = jax.random.normal(k_i2, (96, d2), jnp.float32)
    us2 = jax.random.randint(k_uid2, (b2,), 0, 64, jnp.int32)
    is2 = jax.random.randint(k_iid2, (b2,), 0, 96, jnp.int32)
    scores2 = puremf_forward(ut2, it2, us2, is2, max_tile_b=128)
    jax.block_until_ready(scores2)
    ref2 = jax.nn.sigmoid(jnp.sum(ut2[us2] * it2[is2], axis=1))
    assert scores2.shape == (b2,)
    assert jnp.allclose(scores2, ref2, atol=1e-5, rtol=1e-5)

    print("KERNEL_OK")
</pallas_src>

<mosaic_0001>
module attributes {stable_mosaic.version = 11 : i64} {
  func.func @puremf_score_kernel(%arg0: i32, %arg1: memref<8x32xf32, #tpu.memory_space<vmem>>, %arg2: memref<8x32xf32, #tpu.memory_space<vmem>>, %arg3: memref<8x1xf32, #tpu.memory_space<vmem>>) attributes {dimension_semantics = [#tpu.dimension_semantics<parallel>], iteration_bounds = array<i64: 1>, scalar_prefetch = 0 : i64, scratch_operands = 0 : i64, tpu.core_type = #tpu.core_type<tc>, window_params = [{transform_indices = @transform_0, window_bounds = array<i64: 8, 32>}, {transform_indices = @transform_1, window_bounds = array<i64: 8, 32>}, {transform_indices = @transform_2, window_bounds = array<i64: 8, 1>}]} {
    %c0 = arith.constant 0 : index
    %c0_0 = arith.constant 0 : index
    %0 = vector.load %arg1[%c0, %c0_0] : memref<8x32xf32, #tpu.memory_space<vmem>>, vector<8x32xf32>
    %c0_1 = arith.constant 0 : index
    %c0_2 = arith.constant 0 : index
    %1 = vector.load %arg2[%c0_1, %c0_2] : memref<8x32xf32, #tpu.memory_space<vmem>>, vector<8x32xf32>
    %2 = arith.mulf %0, %1 : vector<8x32xf32>
    %cst = arith.constant dense<0.000000e+00> : vector<8xf32>
    %3 = vector.multi_reduction <add>, %2, %cst [1] : vector<8x32xf32> to vector<8xf32>
    %4 = vector.shape_cast %3 : vector<8xf32> to vector<8x1xf32>
    %5 = arith.negf %4 : vector<8x1xf32>
    %6 = math.exp %5 : vector<8x1xf32>
    %cst_3 = arith.constant 1.000000e+00 : f32
    %7 = vector.broadcast %cst_3 : f32 to vector<8x1xf32>
    %8 = arith.addf %7, %6 : vector<8x1xf32>
    %9 = arith.divf %7, %8 : vector<8x1xf32>
    %c0_4 = arith.constant 0 : index
    %c0_5 = arith.constant 0 : index
    %10 = vector.load %arg3[%c0_4, %c0_5] : memref<8x1xf32, #tpu.memory_space<vmem>>, vector<8x1xf32>
    tpu.vector_store %arg3[%c0_4, %c0_5], %9 {strides = array<i32>} : memref<8x1xf32, #tpu.memory_space<vmem>>, vector<8x1xf32>,
    return
  }
  func.func @transform_0(%arg0: i32) -> (i32, i32) {
    %c0_i32 = arith.constant 0 : i32
    %c0_i32_0 = arith.constant 0 : i32
    return %arg0, %c0_i32 : i32, i32
  }
  func.func @transform_1(%arg0: i32) -> (i32, i32) {
    %c0_i32 = arith.constant 0 : i32
    %c0_i32_0 = arith.constant 0 : i32
    return %arg0, %c0_i32 : i32, i32
  }
  func.func @transform_2(%arg0: i32) -> (i32, i32) {
    %c0_i32 = arith.constant 0 : i32
    %c0_i32_0 = arith.constant 0 : i32
    return %arg0, %c0_i32 : i32, i32
  }
}

</mosaic_0001>

<bundles_post_ra>
// kernel: tpu_custom_call.1
= control target key start
LH: loop header
LB: loop body
LE: loop exit
PB: predicated region body
PF: predicated region fallthrough
CT: control target
= control target key end

     0   :  { %7 = vsyncpa [#allocation3], 0  ;;  %s133_s0 = inlined_call_operand.hbm [shape: f32[8,32], index: 0, kind: input, shape index: {}]   ;;  %s134_s1 = inlined_call_operand.hbm [shape: f32[8,32], index: 1, kind: input, shape index: {}]   ;;  %s135_s2 = inlined_call_operand.vmem [shape: f32[8,1], index: 2, kind: output, shape index: {}]  }
   0x1   :  { %8 = vsyncpa [#allocation5], 0  ;;  %s107_s9 = smov [#allocation2]   ;;  %s108_s11 = smov [#allocation4]  }
   0x2   :  { %s15_s10 = sshll.u32 %s107_s9, 4  ;;  %s25_s12 = sshll.u32 %s108_s11, 4  ;;  %s16_s10 = int_to_ptr.vmem [resolvable:$true] %s15_s10  ;;  %s26_s12 = int_to_ptr.vmem [resolvable:$true] %s25_s12 }
   0x3   :  { %s71_s13 = scalar_lea.vmem %s16_s10, 128  ;;  %p76_p1 = scmp.lt.s32.totalorder %s16_s10, %s16_s10 }
   0x4   :  { %p72_p0 = scmp.ne.s32.totalorder %s16_s10, %s71_s13  ;;  %p77_p2 = scmp.lt.s32.totalorder %s71_s13, %s71_s13 }
   0x6   :  { %p78_p3 = por %p77_p2, %p76_p1 }
   0x8   :  { %p79_p4 = pnand %p78_p3, %p72_p0 }
   0xa   :  { %82 = shalt.err (!%p79_p4)
}
   0xb   :  { %18 = dma.hbm_to_vmem [thread:$0]  %s133_s0, 128, %s16_s10, [#allocation3]  }
   0xc   :  { %s91_s16 = scalar_lea.vmem %s26_s12, 128  ;;  %p96_p6 = scmp.lt.s32.totalorder %s26_s12, %s26_s12 }
   0xd   :  { %p92_p5 = scmp.ne.s32.totalorder %s26_s12, %s91_s16  ;;  %p97_p7 = scmp.lt.s32.totalorder %s91_s16, %s91_s16 }
   0xf   :  { %p98_p8 = por %p97_p7, %p96_p6 }
  0x11   :  { %p99_p9 = pnand %p98_p8, %p92_p5 }
  0x13   :  { %102 = shalt.err (!%p99_p9)
}
  0x14   :  { %28 = dma.hbm_to_vmem [thread:$0]  %s134_s1, 128, %s26_s12, [#allocation5]  }
  0x15   :  { %103 = dma.done.wait [#allocation3], 128  }
  0x16   :  { %104 = vsyncadd [#allocation3], 4294967168 }
  0x17   :  { %105 = dma.done.wait [#allocation5], 128  }
  0x18   :  { %106 = vsyncadd [#allocation5], 4294967168  ;;  %v35_v0 = vld [vmem:[#allocation2] sm:$0xff]  ;;  %v36_v1 = vld [vmem:[#allocation4] sm:$0xff]  ;;  %vm38_vm0 = vcmask 261120   ;;  %vm48_vm1 = vcmask 7168  }
  0x19   :  { %v37_v2 = vmul.f32 %v36_v1, %v35_v0 }
  0x1b   :  { %v39_v3 = vsel %vm38_vm0, %v37_v2, 0.0 }
  0x1c   :  { %40 = vadd.xlane.f32.xlu0 %v39_v3 }
  0xa5   :  { %v41_v4 = vpop.xlane.xlu0 %40 }
  0xa6   :  { %v56_v5 = vmul.f32 -1.442695, %v41_v4 }
  0xa8   :  { %59 = vpow2.f32 %v56_v5 }
  0xb5   :  { %v60_v6 = vpop.eup %59 }
  0xb6   :  { %v45_v7 = vadd.f32 1.0, %v60_v6 }
  0xb8   :  { %61 = vrcp.f32 %v45_v7 }
  0xc5   :  { %v62_v8 = vpop.eup %61 }
  0xc6   :  { %49 = vst.msk [vmem:[%s135_s2] sm:$0xff] %vm48_vm1, %v62_v8 }
  0xc7   :  { %54 = vsyncpa [#allocation3], 1 }
  0xc8   :  { %55 = vsyncpa [#allocation5], 1 }

</bundles_post_ra>
